<compile_context>
chip_gen: v7x
topology: tpu7x:2x2x1
jax: 0.10.0
libtpu: 0.0.40
codegen_flags: <defaults>
</compile_context>

<pallas_src>
import jax
import jax.numpy as jnp
from jax.experimental import pallas as pl
from jax.experimental.pallas import tpu as pltpu


def _round_up(x, m):
    return (x + m - 1) // m * m


def patch_embed_kernel(x_ref, w_ref, b_ref, o_ref):
    # x_ref: (TM, K) bf16   w_ref: (K, E) bf16   b_ref: (1, E) f32
    # o_ref: (TM, E) out_dtype
    # MXU matmul with f32 accumulation, bias added on the f32 accumulator,
    # single cast on store.
    acc = jnp.dot(x_ref[...], w_ref[...], preferred_element_type=jnp.float32)
    o_ref[...] = (acc + b_ref[...]).astype(o_ref.dtype)


def _projection_call(TM, M, K, E, out_dtype, compute_dtype, vmem_limit_bytes,
                     single_buffer_consts):
    """Builds the pallas_call for the (M, K) @ (K, E) + bias projection."""
    const_kw = {}
    if single_buffer_consts:
        # Constant-index operands stay resident in VMEM; double-buffering them
        # would only waste K*E*itemsize (+ bias) bytes of VMEM.
        const_kw = dict(pipeline_mode=pl.Buffered(1))

    act_itemsize = jnp.dtype(compute_dtype).itemsize
    out_itemsize = jnp.dtype(out_dtype).itemsize
    cost = pl.CostEstimate(
        flops=2 * M * K * E,
        transcendentals=0,
        bytes_accessed=(M * K * act_itemsize + K * E * act_itemsize
                        + E * 4 + M * E * out_itemsize),
    )

    # Ragged last M tile is safe: out-of-range input rows hold unspecified
    # data, but the matmul is row-independent and the matching out-of-range
    # output rows are masked on the store, so they never reach HBM.
    return pl.pallas_call(
        patch_embed_kernel,
        out_shape=jax.ShapeDtypeStruct((M, E), out_dtype),
        grid_spec=pltpu.PrefetchScalarGridSpec(
            num_scalar_prefetch=0,
            grid=(pl.cdiv(M, TM),),
            in_specs=[
                # activation tile: streams over M, double-buffered by Pallas
                pl.BlockSpec((TM, K), lambda i: (i, 0)),
                # weight: constant index -> resident in VMEM
                pl.BlockSpec((K, E), lambda i: (0, 0), **const_kw),
                # bias row (f32)
                pl.BlockSpec((1, E), lambda i: (0, 0), **const_kw),
            ],
            out_specs=pl.BlockSpec((TM, E), lambda i: (i, 0)),
        ),
        compiler_params=pltpu.CompilerParams(
            # Independent M tiles -> shard across both TensorCores on v7x.
            dimension_semantics=("parallel",),
            vmem_limit_bytes=vmem_limit_bytes,
        ),
        cost_estimate=cost,
    )


def patch_embedding(x, weight, bias, patch_size, *,
                    compute_dtype=jnp.bfloat16, out_dtype=None, tm=1024):
    """x: (B, C, H, W) NCHW.  weight: (embed_dim, C, p, p) (nn.Conv2d OIHW).
    bias: (embed_dim,).  Returns (B, n_patches, embed_dim) — same semantics as
    the PyTorch module.  Pass out_dtype=jnp.bfloat16 when the downstream
    consumer (LayerNorm / transformer stack) runs in bf16: the f32 output
    write is otherwise the dominant HBM stream of this memory-bound op."""
    B, C, H, W = x.shape
    p = patch_size
    E, Cw, ph, pw = weight.shape
    assert (Cw, ph, pw) == (C, p, p)
    assert H % p == 0 and W % p == 0
    hp, wp = H // p, W // p
    n_patches = hp * wp
    if out_dtype is None:
        out_dtype = x.dtype          # keep the PyTorch module's dtype contract

    K = C * p * p
    M = B * n_patches

    # --- glue: the single unavoidable rearrangement copy -------------------
    # (B, C, hp, p, wp, p) -> (B, hp, wp, C, p, p) -> (M, K).  The bf16 cast
    # fuses into this transpose copy, so the activation is read once (f32) and
    # written once (bf16).  No padding anywhere, so there are no extra
    # pad/slice HBM passes and the final reshape below is a free view.
    # TODO(synk): fold this rearrangement into the kernel itself (grid over
    # (B, patch-row blocks) + in-VMEM reorder) to drop the remaining extra
    # bf16 read+write of the activation; the 5-D minor-dim transpose does not
    # lower cleanly/efficiently in Mosaic today.
    xp = (x.astype(compute_dtype)
            .reshape(B, C, hp, p, wp, p)
            .transpose(0, 2, 4, 1, 3, 5)
            .reshape(M, K))
    # Conv weight (E, C, p, p) -> matmul weight (K, E); tiny, negligible cost.
    w_mat = weight.astype(compute_dtype).reshape(E, K).T
    b_mat = bias.astype(jnp.float32).reshape(1, E)

    # --- tiling --------------------------------------------------------------
    TM = min(tm, _round_up(M, 8))
    # If the whole problem would fit one tile but there is enough work to
    # split, halve the tile so the v7x megacore (2 TCs) gets >= 2 parallel
    # tiles (v5e/v6e are single-TC: harmless there).
    if TM >= M and M >= 256:
        TM = _round_up(pl.cdiv(M, 2), 8)

    act_itemsize = jnp.dtype(compute_dtype).itemsize
    out_itemsize = jnp.dtype(out_dtype).itemsize
    vmem_need = (2 * TM * K * act_itemsize      # activation tile (dbl-buffered)
                 + 2 * TM * E * out_itemsize    # output tile (dbl-buffered)
                 + 2 * K * E * act_itemsize     # weight (worst case dbl-buffered)
                 + 2 * E * 4)                   # bias
    vmem_limit_bytes = min(int(vmem_need * 1.3) + (8 << 20), 96 << 20)

    args = (xp, w_mat, b_mat)
    try:
        out = _projection_call(TM, M, K, E, out_dtype, compute_dtype,
                               vmem_limit_bytes, True)(*args)
    except Exception:
        # pl.Buffered(1) not supported by this jax/libtpu combo -> fall back
        # to default (double) buffering of the resident weight/bias.
        out = _projection_call(TM, M, K, E, out_dtype, compute_dtype,
                               vmem_limit_bytes, False)(*args)

    return out.reshape(B, n_patches, E)


if __name__ == "__main__":
    # Small shapes consistent with the module: img=16, patch=4 -> 16 patches.
    B, C, H, W = 2, 4, 16, 16
    patch_size = 4
    embed_dim = 32

    key = jax.random.PRNGKey(0)
    kx, kw, kb = jax.random.split(key, 3)

    x = jax.random.normal(kx, (B, C, H, W), dtype=jnp.float32)
    # Deterministic synthetic Conv2d parameters (shapes per nn.Conv2d).
    weight = jax.random.normal(
        kw, (embed_dim, C, patch_size, patch_size), dtype=jnp.float32) * 0.02
    bias = jax.random.normal(kb, (embed_dim,), dtype=jnp.float32) * 0.02

    out = patch_embedding(x, weight, bias, patch_size)
    out = jax.block_until_ready(out)

    # Reference: plain-JAX strided conv on the same bf16-cast inputs with f32
    # accumulation (matches the kernel's compute dtype, so only summation
    # order differs).
    ref = jax.lax.conv_general_dilated(
        x.astype(jnp.bfloat16), weight.astype(jnp.bfloat16),
        window_strides=(patch_size, patch_size),
        padding="VALID",
        dimension_numbers=("NCHW", "OIHW", "NCHW"),
        preferred_element_type=jnp.float32,
    )
    ref = ref.reshape(B, embed_dim, -1).transpose(0, 2, 1) + bias.reshape(1, 1, -1)

    n_patches = (H // patch_size) * (W // patch_size)
    assert out.shape == (B, n_patches, embed_dim)
    assert out.dtype == x.dtype
    assert jnp.allclose(out, ref, atol=2e-3, rtol=2e-3)
    print("KERNEL_OK")
</pallas_src>

<mosaic_0001>
module attributes {stable_mosaic.version = 11 : i64} {
  func.func @patch_embed_kernel(%arg0: i32, %arg1: memref<32x64xbf16, #tpu.memory_space<vmem>>, %arg2: memref<64x32xbf16, #tpu.memory_space<vmem>>, %arg3: memref<1x32xf32, #tpu.memory_space<vmem>>, %arg4: memref<32x32xf32, #tpu.memory_space<vmem>>) attributes {dimension_semantics = [#tpu.dimension_semantics<parallel>], iteration_bounds = array<i64: 1>, scalar_prefetch = 0 : i64, scratch_operands = 0 : i64, tpu.core_type = #tpu.core_type<tc>, window_params = [{transform_indices = @transform_0, window_bounds = array<i64: 32, 64>}, {pipeline_mode = #tpu.pipeline_mode<synchronous>, transform_indices = @transform_1, window_bounds = array<i64: 64, 32>}, {pipeline_mode = #tpu.pipeline_mode<synchronous>, transform_indices = @transform_2, window_bounds = array<i64: 1, 32>}, {transform_indices = @transform_3, window_bounds = array<i64: 32, 32>}]} {
    %c0 = arith.constant 0 : index
    %c0_0 = arith.constant 0 : index
    %0 = vector.load %arg1[%c0, %c0_0] : memref<32x64xbf16, #tpu.memory_space<vmem>>, vector<32x64xbf16>
    %c0_1 = arith.constant 0 : index
    %c0_2 = arith.constant 0 : index
    %1 = vector.load %arg2[%c0_1, %c0_2] : memref<64x32xbf16, #tpu.memory_space<vmem>>, vector<64x32xbf16>
    %cst = arith.constant dense<0.000000e+00> : vector<32x32xf32>
    %2 = tpu.matmul %0, %1, %cst {dimension_numbers = #tpu.dot_dimension_numbers<[1], [0], [0], [1], [0, 0, 1, 1], [], []>} : vector<32x64xbf16>, vector<64x32xbf16>, vector<32x32xf32> -> vector<32x32xf32>
    %c0_3 = arith.constant 0 : index
    %c0_4 = arith.constant 0 : index
    %3 = vector.load %arg3[%c0_3, %c0_4] : memref<1x32xf32, #tpu.memory_space<vmem>>, vector<1x32xf32>
    %4 = vector.broadcast %3 : vector<1x32xf32> to vector<32x32xf32>
    %5 = arith.addf %2, %4 : vector<32x32xf32>
    %c0_5 = arith.constant 0 : index
    %c0_6 = arith.constant 0 : index
    %6 = vector.load %arg4[%c0_5, %c0_6] : memref<32x32xf32, #tpu.memory_space<vmem>>, vector<32x32xf32>
    tpu.vector_store %arg4[%c0_5, %c0_6], %5 {strides = array<i32>} : memref<32x32xf32, #tpu.memory_space<vmem>>, vector<32x32xf32>,
    return
  }
  func.func @transform_0(%arg0: i32) -> (i32, i32) {
    %c0_i32 = arith.constant 0 : i32
    %c0_i32_0 = arith.constant 0 : i32
    return %arg0, %c0_i32 : i32, i32
  }
  func.func @transform_1(%arg0: i32) -> (i32, i32) {
    %c0_i32 = arith.constant 0 : i32
    %c0_i32_0 = arith.constant 0 : i32
    %c0_i32_1 = arith.constant 0 : i32
    return %c0_i32, %c0_i32_0 : i32, i32
  }
  func.func @transform_2(%arg0: i32) -> (i32, i32) {
    %c0_i32 = arith.constant 0 : i32
    %c0_i32_0 = arith.constant 0 : i32
    %c0_i32_1 = arith.constant 0 : i32
    return %c0_i32, %c0_i32_0 : i32, i32
  }
  func.func @transform_3(%arg0: i32) -> (i32, i32) {
    %c0_i32 = arith.constant 0 : i32
    %c0_i32_0 = arith.constant 0 : i32
    return %arg0, %c0_i32 : i32, i32
  }
}

module attributes {stable_mosaic.version = 11 : i64} {
  func.func @patch_embed_kernel(%arg0: i32, %arg1: memref<32x64xbf16, #tpu.memory_space<vmem>>, %arg2: memref<64x32xbf16, #tpu.memory_space<vmem>>, %arg3: memref<1x32xf32, #tpu.memory_space<vmem>>, %arg4: memref<32x32xf32, #tpu.memory_space<vmem>>) attributes {dimension_semantics = [#tpu.dimension_semantics<parallel>], iteration_bounds = array<i64: 1>, scalar_prefetch = 0 : i64, scratch_operands = 0 : i64, tpu.core_type = #tpu.core_type<tc>, window_params = [{transform_indices = @transform_0, window_bounds = array<i64: 32, 64>}, {pipeline_mode = #tpu.pipeline_mode<synchronous>, transform_indices = @transform_1, window_bounds = array<i64: 64, 32>}, {pipeline_mode = #tpu.pipeline_mode<synchronous>, transform_indices = @transform_2, window_bounds = array<i64: 1, 32>}, {transform_indices = @transform_3, window_bounds = array<i64: 32, 32>}]} {
    %c0 = arith.constant 0 : index
    %c0_0 = arith.constant 0 : index
    %0 = vector.load %arg1[%c0, %c0_0] : memref<32x64xbf16, #tpu.memory_space<vmem>>, vector<32x64xbf16>
    %c0_1 = arith.constant 0 : index
    %c0_2 = arith.constant 0 : index
    %1 = vector.load %arg2[%c0_1, %c0_2] : memref<64x32xbf16, #tpu.memory_space<vmem>>, vector<64x32xbf16>
    %cst = arith.constant dense<0.000000e+00> : vector<32x32xf32>
    %2 = tpu.matmul %0, %1, %cst {dimension_numbers = #tpu.dot_dimension_numbers<[1], [0], [0], [1], [0, 0, 1, 1], [], []>} : vector<32x64xbf16>, vector<64x32xbf16>, vector<32x32xf32> -> vector<32x32xf32>
    %c0_3 = arith.constant 0 : index
    %c0_4 = arith.constant 0 : index
    %3 = vector.load %arg3[%c0_3, %c0_4] : memref<1x32xf32, #tpu.memory_space<vmem>>, vector<1x32xf32>
    %4 = vector.broadcast %3 : vector<1x32xf32> to vector<32x32xf32>
    %5 = arith.addf %2, %4 : vector<32x32xf32>
    %c0_5 = arith.constant 0 : index
    %c0_6 = arith.constant 0 : index
    %6 = vector.load %arg4[%c0_5, %c0_6] : memref<32x32xf32, #tpu.memory_space<vmem>>, vector<32x32xf32>
    tpu.vector_store %arg4[%c0_5, %c0_6], %5 {strides = array<i32>} : memref<32x32xf32, #tpu.memory_space<vmem>>, vector<32x32xf32>,
    return
  }
  func.func @transform_0(%arg0: i32) -> (i32, i32) {
    %c0_i32 = arith.constant 0 : i32
    %c0_i32_0 = arith.constant 0 : i32
    return %arg0, %c0_i32 : i32, i32
  }
  func.func @transform_1(%arg0: i32) -> (i32, i32) {
    %c0_i32 = arith.constant 0 : i32
    %c0_i32_0 = arith.constant 0 : i32
    %c0_i32_1 = arith.constant 0 : i32
    return %c0_i32, %c0_i32_0 : i32, i32
  }
  func.func @transform_2(%arg0: i32) -> (i32, i32) {
    %c0_i32 = arith.constant 0 : i32
    %c0_i32_0 = arith.constant 0 : i32
    %c0_i32_1 = arith.constant 0 : i32
    return %c0_i32, %c0_i32_0 : i32, i32
  }
  func.func @transform_3(%arg0: i32) -> (i32, i32) {
    %c0_i32 = arith.constant 0 : i32
    %c0_i32_0 = arith.constant 0 : i32
    return %arg0, %c0_i32 : i32, i32
  }
}

</mosaic_0001>

<bundles_post_ra>
// kernel: tpu_custom_call.1
= control target key start
LH: loop header
LB: loop body
LE: loop exit
PB: predicated region body
PF: predicated region fallthrough
CT: control target
= control target key end

     0   :  { %vm69_vm0 = vcmask 523264   ;;  %s262_s0 = inlined_call_operand.vmem [shape: bf16[32,64], index: 0, kind: input, shape index: {}]   ;;  %s263_s1 = inlined_call_operand.vmem [shape: bf16[64,32], index: 1, kind: input, shape index: {}]   ;;  %s264_s2 = inlined_call_operand.vmem [shape: f32[1,32], index: 2, kind: input, shape index: {}]   ;;  %s265_s3 = inlined_call_operand.hbm [shape: f32[32,32], index: 3, kind: output, shape index: {}]  }
   0x1   :  { %v176_v0 = vld [vmem:[%s263_s1] sm:$0xff]   ;;  %v177_v1 = vld [vmem:[%s263_s1 + $0x8] sm:$0xff]   ;;  %v178_v2 = vld [vmem:[%s263_s1 + $0x10] sm:$0xff]  }
   0x2   :  { %161 = vmatprep.subr.bf16.mxu0 %v176_v0  ;;  %v180_v3 = vld [vmem:[%s262_s0] sm:$0xff]  }
   0x3   :  { %162 = vmatpush3.bf16.msra.mxu0 %v176_v0  ;;  %169 = vmatprep.mubr.msk.bf16.mxu0 %vm69_vm0, %v180_v3 }
   0x4   :  { %163 = vmatprep.subr.bf16.mxu0 %v177_v1 }
   0x5   :  { %8 = vsyncpa [#allocation3], 0  ;;  %v179_v4 = vld [vmem:[%s263_s1 + $0x18] sm:$0xff]   ;;  %v181_v5 = vld [vmem:[%s262_s0 + $0x8] sm:$0xff]   ;;  %vm125_vm1 = vcmask 261120   ;;  %s206_s26 = smov [#allocation2]  }
   0x6   :  { %v146_v6 = vld [vmem:[%s264_s2] ss:$0 sm:$0xff]  ;;  %s135_s27 = sshll.u32 %s206_s26, 4  ;;  %s136_s27 = int_to_ptr.vmem [resolvable:$true] %s135_s27 }
   0x7   :  { %164 = vmatpush3.bf16.msra.mxu0 %v177_v1  ;;  %s182_s0 = scalar_lea.vmem %s136_s27, 512  ;;  %p187_p1 = scmp.lt.s32.totalorder %s136_s27, %s136_s27 }
   0x8   :  { %165 = vmatprep.subr.bf16.mxu0 %v178_v2  ;;  %p183_p0 = scmp.ne.s32.totalorder %s136_s27, %s182_s0  ;;  %p188_p2 = scmp.lt.s32.totalorder %s182_s0, %s182_s0 }
   0xa   :  { %p189_p3 = por %p188_p2, %p187_p1 }
   0xb   :  { %166 = vmatpush3.bf16.msra.mxu0 %v178_v2 }
   0xc   :  { %167 = vmatprep.subr.bf16.mxu0 %v179_v4  ;;  %p190_p4 = pnand %p189_p3, %p183_p0 }
   0xf   :  { %168 = vmatpush3.bf16.msra.mxu0 %v179_v4 }
  0x12   :  { %170 = vmatmul.mubr.msk.bf16.vlgmr.msra.gmra.mrb[0].mxu0 %vm69_vm0, %v181_v5 }
  0xe5   :  { %v171_v7 = vpop.f32.mrb[0].mxu0 }
  0xe6   :  { %v119_v8 = vadd.f32 %v171_v7, %v146_v6  ;;  %v110_v9 = vpop.f32.mrb[1].mxu0 }
  0xe7   :  { %v111_v10 = vadd.f32 %v146_v6, %v110_v9  ;;  %v172_v11 = vpop.f32.mrb[2].mxu0 }
  0xe8   :  { %128 = vst.msk [vmem:[#allocation2 + $0x10] sm:$0xff] %vm125_vm1, %v119_v8  ;;  %v122_v12 = vadd.f32 %v172_v11, %v146_v6  ;;  %v113_v13 = vpop.f32.mrb[3].mxu0 }
  0xe9   :  { %126 = vst.msk [vmem:[#allocation2] sm:$0xff] %vm125_vm1, %v111_v10  ;;  %v114_v14 = vadd.f32 %v146_v6, %v113_v13 }
  0xea   :  { %129 = vst.msk [vmem:[#allocation2 + $0x18] sm:$0xff] %vm125_vm1, %v122_v12 }
  0xeb   :  { %127 = vst.msk [vmem:[#allocation2 + $0x8] sm:$0xff] %vm125_vm1, %v114_v14 }
  0xec   :  { %193 = shalt.err (!%p190_p4)
}
  0xed   :  { %s194_s28 = scalar_lea.hbm %s265_s3, 512 }
  0xee   :  { %p195_p5 = scmp.ne.s32.totalorder %s265_s3, %s194_s28  ;;  %p198_p6 = scmp.lt.u32.totalorder %s194_s28, %s265_s3 }
  0xf0   :  { %p200_p7 = pnand %p198_p6, %p195_p5 }
  0xf2   :  { %203 = shalt.err (!%p200_p7)
}
  0xf3   :  { %s207_s6 = smov 128   ;;  %s208_s7 = smov 8  }
  0xf4   :  { %141 = dma.vmem_to_hbm [thread:$0]  %s136_s27, 512, %s265_s3, [#allocation3], %s207_s6, %s207_s6, %s208_s7  }
  0xf5   :  { %204 = dma.done.wait [#allocation3], 512  }
  0xf6   :  { %205 = vsyncadd [#allocation3], 4294966784 }
  0xf7   :  { %145 = vsyncpa [#allocation3], 1 }

// kernel: tpu_custom_call.1
= control target key start
LH: loop header
LB: loop body
LE: loop exit
PB: predicated region body
PF: predicated region fallthrough
CT: control target
= control target key end

     0   :  { %vm69_vm0 = vcmask 523264   ;;  %s262_s0 = inlined_call_operand.vmem [shape: bf16[32,64], index: 0, kind: input, shape index: {}]   ;;  %s263_s1 = inlined_call_operand.vmem [shape: bf16[64,32], index: 1, kind: input, shape index: {}]   ;;  %s264_s2 = inlined_call_operand.vmem [shape: f32[1,32], index: 2, kind: input, shape index: {}]   ;;  %s265_s3 = inlined_call_operand.hbm [shape: f32[32,32], index: 3, kind: output, shape index: {}]  }
   0x1   :  { %v176_v0 = vld [vmem:[%s263_s1] sm:$0xff]   ;;  %v177_v1 = vld [vmem:[%s263_s1 + $0x8] sm:$0xff]   ;;  %v178_v2 = vld [vmem:[%s263_s1 + $0x10] sm:$0xff]  }
   0x2   :  { %161 = vmatprep.subr.bf16.mxu0 %v176_v0  ;;  %v180_v3 = vld [vmem:[%s262_s0] sm:$0xff]  }
   0x3   :  { %162 = vmatpush3.bf16.msra.mxu0 %v176_v0  ;;  %169 = vmatprep.mubr.msk.bf16.mxu0 %vm69_vm0, %v180_v3 }
   0x4   :  { %163 = vmatprep.subr.bf16.mxu0 %v177_v1 }
   0x5   :  { %8 = vsyncpa [#allocation3], 0  ;;  %v179_v4 = vld [vmem:[%s263_s1 + $0x18] sm:$0xff]   ;;  %v181_v5 = vld [vmem:[%s262_s0 + $0x8] sm:$0xff]   ;;  %vm125_vm1 = vcmask 261120   ;;  %s206_s26 = smov [#allocation2]  }
   0x6   :  { %v146_v6 = vld [vmem:[%s264_s2] ss:$0 sm:$0xff]  ;;  %s135_s27 = sshll.u32 %s206_s26, 4  ;;  %s136_s27 = int_to_ptr.vmem [resolvable:$true] %s135_s27 }
   0x7   :  { %164 = vmatpush3.bf16.msra.mxu0 %v177_v1  ;;  %s182_s0 = scalar_lea.vmem %s136_s27, 512  ;;  %p187_p1 = scmp.lt.s32.totalorder %s136_s27, %s136_s27 }
   0x8   :  { %165 = vmatprep.subr.bf16.mxu0 %v178_v2  ;;  %p183_p0 = scmp.ne.s32.totalorder %s136_s27, %s182_s0  ;;  %p188_p2 = scmp.lt.s32.totalorder %s182_s0, %s182_s0 }
   0xa   :  { %p189_p3 = por %p188_p2, %p187_p1 }
   0xb   :  { %166 = vmatpush3.bf16.msra.mxu0 %v178_v2 }
   0xc   :  { %167 = vmatprep.subr.bf16.mxu0 %v179_v4  ;;  %p190_p4 = pnand %p189_p3, %p183_p0 }
   0xf   :  { %168 = vmatpush3.bf16.msra.mxu0 %v179_v4 }
  0x12   :  { %170 = vmatmul.mubr.msk.bf16.vlgmr.msra.gmra.mrb[0].mxu0 %vm69_vm0, %v181_v5 }
  0xe5   :  { %v171_v7 = vpop.f32.mrb[0].mxu0 }
  0xe6   :  { %v119_v8 = vadd.f32 %v171_v7, %v146_v6  ;;  %v110_v9 = vpop.f32.mrb[1].mxu0 }
  0xe7   :  { %v111_v10 = vadd.f32 %v146_v6, %v110_v9  ;;  %v172_v11 = vpop.f32.mrb[2].mxu0 }
  0xe8   :  { %128 = vst.msk [vmem:[#allocation2 + $0x10] sm:$0xff] %vm125_vm1, %v119_v8  ;;  %v122_v12 = vadd.f32 %v172_v11, %v146_v6  ;;  %v113_v13 = vpop.f32.mrb[3].mxu0 }
  0xe9   :  { %126 = vst.msk [vmem:[#allocation2] sm:$0xff] %vm125_vm1, %v111_v10  ;;  %v114_v14 = vadd.f32 %v146_v6, %v113_v13 }
  0xea   :  { %129 = vst.msk [vmem:[#allocation2 + $0x18] sm:$0xff] %vm125_vm1, %v122_v12 }
  0xeb   :  { %127 = vst.msk [vmem:[#allocation2 + $0x8] sm:$0xff] %vm125_vm1, %v114_v14 }
  0xec   :  { %193 = shalt.err (!%p190_p4)
}
  0xed   :  { %s194_s28 = scalar_lea.hbm %s265_s3, 512 }
  0xee   :  { %p195_p5 = scmp.ne.s32.totalorder %s265_s3, %s194_s28  ;;  %p198_p6 = scmp.lt.u32.totalorder %s194_s28, %s265_s3 }
  0xf0   :  { %p200_p7 = pnand %p198_p6, %p195_p5 }
  0xf2   :  { %203 = shalt.err (!%p200_p7)
}
  0xf3   :  { %s207_s6 = smov 128   ;;  %s208_s7 = smov 8  }
  0xf4   :  { %141 = dma.vmem_to_hbm [thread:$0]  %s136_s27, 512, %s265_s3, [#allocation3], %s207_s6, %s207_s6, %s208_s7  }
  0xf5   :  { %204 = dma.done.wait [#allocation3], 512  }
  0xf6   :  { %205 = vsyncadd [#allocation3], 4294966784 }
  0xf7   :  { %145 = vsyncpa [#allocation3], 1 }

</bundles_post_ra>
